<compile_context>
chip_gen: v7x
topology: tpu7x:2x2x1
jax: 0.10.0
libtpu: 0.0.40
codegen_flags: <defaults>
</compile_context>

<pallas_src>
import functools

import jax
import jax.numpy as jnp
from jax.experimental import pallas as pl
from jax.experimental.pallas import tpu as pltpu

_LANE = 128
_WIDTHS = (1024, 512, 256, 128)        # widest lane-dense width dividing the slab
_TARGET_BLOCK_BYTES = 4 << 20          # ~4 MiB contiguous blocks
_MIN_GRID_STEPS = 8                    # keep pipelining + both v7x TCs busy
_VMEM_LIMIT_BYTES = 32 << 20           # explicit: safe on v5e/v6e/v7x


def _cdiv(a: int, b: int) -> int:
    return -(-a // b)


def _round_up(a: int, b: int) -> int:
    return _cdiv(a, b) * b


def _sublane_multiple(dtype) -> int:
    # f32 -> 8, bf16 -> 16, int8/fp8 -> 32 (sub-32-bit dtypes pack along sublanes)
    return {4: 8, 2: 16, 1: 32}.get(jnp.dtype(dtype).itemsize, 8)


def _hswish_math(x):
    # relu6(x + 3) / 6 ; compute in f32, cast back to the input dtype.
    xf = x.astype(jnp.float32)
    return (xf * (jnp.clip(xf + 3.0, 0.0, 6.0) / 6.0)).astype(x.dtype)


def _hswish_kernel(x_ref, o_ref):
    o_ref[...] = _hswish_math(x_ref[...])


@jax.jit
def h_swish(x: jax.Array) -> jax.Array:
    """Elementwise hard-swish. Accepts any shape (e.g. NCHW), preserves dtype."""
    orig_shape = x.shape
    dtype = x.dtype
    itemsize = jnp.dtype(dtype).itemsize
    n = x.size
    if n == 0:
        return x

    rem = n % _LANE
    n_aligned = n - rem

    # Tiny inputs (< 128 elements): a kernel launch is pure overhead.
    if n_aligned == 0:
        return _hswish_math(x)

    flat = x.reshape(-1)                       # free bitcast under jit
    main = flat if rem == 0 else flat[:n_aligned]

    # Widest lane-dense width that divides the aligned prefix (>= 128 always
    # gives unmasked stores; block bytes, not width, set DMA burst size).
    width = _LANE
    for cand in _WIDTHS:
        if n_aligned % cand == 0:
            width = cand
            break
    rows = n_aligned // width
    x2d = main.reshape(rows, width)

    # ~4 MiB blocks of sublane-aligned rows, capped so the grid keeps >=
    # _MIN_GRID_STEPS steps when the input is big enough (pipelining + megacore).
    sub = _sublane_multiple(dtype)
    br_target = max(sub, (_TARGET_BLOCK_BYTES // (width * itemsize)) // sub * sub)
    cap = max(sub, _round_up(_cdiv(rows, _MIN_GRID_STEPS), sub))
    block_rows = min(br_target, cap, rows)
    grid = (_cdiv(rows, block_rows),)

    out2d = pl.pallas_call(
        _hswish_kernel,
        out_shape=jax.ShapeDtypeStruct((rows, width), dtype),
        grid=grid,
        in_specs=[pl.BlockSpec((block_rows, width), lambda i: (i, 0))],
        out_specs=pl.BlockSpec((block_rows, width), lambda i: (i, 0)),
        compiler_params=pltpu.CompilerParams(
            dimension_semantics=("parallel",),
            vmem_limit_bytes=_VMEM_LIMIT_BYTES,
        ),
    )(x2d)

    if rem == 0:
        return out2d.reshape(orig_shape)

    # Ragged tail (< 128 elements): plain jnp, identical math.
    tail_out = _hswish_math(flat[n_aligned:])
    return jnp.concatenate([out2d.reshape(-1), tail_out]).reshape(orig_shape)


if __name__ == "__main__":
    key = jax.random.PRNGKey(0)
    # NCHW input, as in the PyTorch module's typical usage.
    x = jax.random.normal(key, (2, 4, 16, 16), dtype=jnp.float32) * 4.0

    y = jax.block_until_ready(h_swish(x))

    y_ref = x * (jnp.clip(x + 3.0, 0.0, 6.0) / 6.0)
    assert y.shape == x.shape and y.dtype == x.dtype
    assert jnp.allclose(y, y_ref, atol=1e-6, rtol=1e-6)

    # Ragged (non-multiple-of-128) size exercises the aligned-prefix + tail path.
    x2 = jax.random.normal(jax.random.PRNGKey(0), (2, 3, 7, 11), dtype=jnp.float32) * 4.0
    y2 = jax.block_until_ready(h_swish(x2))
    y2_ref = x2 * (jnp.clip(x2 + 3.0, 0.0, 6.0) / 6.0)
    assert y2.shape == x2.shape and y2.dtype == x2.dtype
    assert jnp.allclose(y2, y2_ref, atol=1e-6, rtol=1e-6)

    print("KERNEL_OK")
</pallas_src>

<mosaic_0001>
module attributes {stable_mosaic.version = 11 : i64} {
  func.func @_hswish_kernel(%arg0: i32, %arg1: memref<2x1024xf32, #tpu.memory_space<vmem>>, %arg2: memref<2x1024xf32, #tpu.memory_space<vmem>>) attributes {dimension_semantics = [#tpu.dimension_semantics<parallel>], iteration_bounds = array<i64: 1>, scalar_prefetch = 0 : i64, scratch_operands = 0 : i64, tpu.core_type = #tpu.core_type<tc>, window_params = [{transform_indices = @transform_0, window_bounds = array<i64: 2, 1024>}, {transform_indices = @transform_1, window_bounds = array<i64: 2, 1024>}]} {
    %c0 = arith.constant 0 : index
    %c0_0 = arith.constant 0 : index
    %0 = vector.load %arg1[%c0, %c0_0] : memref<2x1024xf32, #tpu.memory_space<vmem>>, vector<2x1024xf32>
    %cst = arith.constant 3.000000e+00 : f32
    %1 = vector.broadcast %cst : f32 to vector<2x1024xf32>
    %2 = arith.addf %0, %1 : vector<2x1024xf32>
    %cst_1 = arith.constant 0.000000e+00 : f32
    %cst_2 = arith.constant 6.000000e+00 : f32
    %3 = vector.broadcast %cst_1 : f32 to vector<2x1024xf32>
    %4 = arith.maximumf %3, %2 : vector<2x1024xf32>
    %5 = vector.broadcast %cst_2 : f32 to vector<2x1024xf32>
    %6 = arith.minimumf %5, %4 : vector<2x1024xf32>
    %cst_3 = arith.constant 6.000000e+00 : f32
    %7 = vector.broadcast %cst_3 : f32 to vector<2x1024xf32>
    %8 = arith.divf %6, %7 : vector<2x1024xf32>
    %9 = arith.mulf %0, %8 : vector<2x1024xf32>
    %c0_4 = arith.constant 0 : index
    %c0_5 = arith.constant 0 : index
    %10 = vector.load %arg2[%c0_4, %c0_5] : memref<2x1024xf32, #tpu.memory_space<vmem>>, vector<2x1024xf32>
    tpu.vector_store %arg2[%c0_4, %c0_5], %9 {strides = array<i32>} : memref<2x1024xf32, #tpu.memory_space<vmem>>, vector<2x1024xf32>,
    return
  }
  func.func @transform_0(%arg0: i32) -> (i32, i32) {
    %c0_i32 = arith.constant 0 : i32
    %c0_i32_0 = arith.constant 0 : i32
    return %arg0, %c0_i32 : i32, i32
  }
  func.func @transform_1(%arg0: i32) -> (i32, i32) {
    %c0_i32 = arith.constant 0 : i32
    %c0_i32_0 = arith.constant 0 : i32
    return %arg0, %c0_i32 : i32, i32
  }
}

</mosaic_0001>

<bundles_post_ra>
// kernel: h_swish.1
= control target key start
LH: loop header
LB: loop body
LE: loop exit
PB: predicated region body
PF: predicated region fallthrough
CT: control target
= control target key end

     0   :  { %s49_s0 = inlined_call_operand.vmem [shape: f32[2,1024], index: 0, kind: input, shape index: {}]   ;;  %s50_s1 = inlined_call_operand.vmem [shape: f32[2,1024], index: 1, kind: output, shape index: {}]  }
   0x1   :  { %v8_v0 = vld [vmem:[%s49_s0] sm:$0xff]  ;;  %v9_v1 = vld [vmem:[%s49_s0 + $0x8] sm:$0xff] }
   0x2   :  { %v10_v2 = vadd.f32 3.0, %v8_v0  ;;  %v11_v3 = vadd.f32 3.0, %v9_v1 }
   0x4   :  { %v12_v4 = vmax.f32 %v10_v2, 0.0  ;;  %v13_v5 = vmax.f32 %v11_v3, 0.0 }
   0x6   :  { %v14_v6 = vmin.f32 %v12_v4, 6.0  ;;  %v15_v7 = vmin.f32 %v13_v5, 6.0 }
   0x8   :  { %v17_v8 = vmul.f32 0.16666667, %v14_v6  ;;  %v18_v9 = vmul.f32 0.16666667, %v15_v7 }
   0xa   :  { %v19_v10 = vmul.f32 %v17_v8, %v8_v0  ;;  %v20_v11 = vmul.f32 %v18_v9, %v9_v1 }
   0xc   :  { %21 = vst [vmem:[%s50_s1] sm:$0xff] %v19_v10  ;;  %22 = vst [vmem:[%s50_s1 + $0x8] sm:$0xff] %v20_v11 }

</bundles_post_ra>
